<compile_context>
chip_gen: v6e
topology: v6e:2x2x1
jax: 0.10.0
libtpu: 0.0.40
codegen_flags: <defaults>
</compile_context>

<pallas_src>
import functools

import jax
import jax.numpy as jnp
from jax.experimental import pallas as pl
from jax.experimental.pallas import tpu as pltpu


def _round_up(x: int, m: int) -> int:
    return ((x + m - 1) // m) * m


def _actor_kernel(x_ref, w1_ref, b1_ref, w2_ref, b2_ref, o_ref, *, action_bound):
    # hidden = relu(x @ W1 + b1)   (MXU matmul, f32 accumulation)
    w1 = w1_ref[...]
    h = jnp.dot(x_ref[...].astype(w1.dtype), w1, preferred_element_type=jnp.float32)
    h = jnp.maximum(h + b1_ref[...], 0.0)          # (TM,H) + (1,H), f32

    # out = tanh(h @ W2 + b2) * action_bound
    w2 = w2_ref[...]
    a = jnp.dot(h.astype(w2.dtype), w2, preferred_element_type=jnp.float32)
    a = a + b2_ref[...]                            # (TM,A) + (1,A), f32
    o_ref[...] = (jnp.tanh(a) * action_bound).astype(o_ref.dtype)


def actor_forward(x, w1, b1, w2, b2, action_bound=10.0, *, block_m=1024):
    """DDPG actor forward.

    x : (B, state_dim)            f32
    w1: (state_dim, hidden)       f32 or bf16 (PyTorch fc1.weight transposed)
    b1: (1, hidden) or (hidden,)  f32
    w2: (hidden, action_dim)      f32 or bf16 (PyTorch fc2.weight transposed)
    b2: (1, action_dim) or (action_dim,) f32
    Returns (B, action_dim) f32.

    For bf16 MXU throughput on v5e/v6e/v7x, cast w1/w2 to bf16 once at
    parameter setup and pass them in; biases / relu / tanh stay f32.
    """
    B, state_dim = x.shape
    hidden = w1.shape[1]
    action_dim = w2.shape[1]
    b1 = b1.reshape(1, hidden)
    b2 = b2.reshape(1, action_dim)

    # --- batch tile selection -------------------------------------------------
    # Multiple of 8 sublanes; capped so that once B > 8 the grid has >= 2
    # iterations (both TensorCores get work on v7x), and never above block_m.
    B8 = _round_up(B, 8)
    TM = min(int(block_m), max(8, _round_up(pl.cdiv(B8, 2), 8)))
    B_p = _round_up(B, TM)
    grid = (B_p // TM,)

    # Row-pad x only when the batch is not a tile multiple (feature dims are
    # never padded).  Padded rows are independent in both GEMMs and sliced off.
    x_in = x if B_p == B else jnp.pad(x, ((0, B_p - B), (0, 0)))

    cost = pl.CostEstimate(
        flops=2 * B * (state_dim * hidden + hidden * action_dim),
        transcendentals=B * action_dim,
        bytes_accessed=4 * (B * state_dim + B * action_dim
                            + state_dim * hidden + hidden
                            + hidden * action_dim + action_dim),
    )

    kernel = functools.partial(_actor_kernel, action_bound=float(action_bound))

    out_p = pl.pallas_call(
        kernel,
        out_shape=jax.ShapeDtypeStruct((B_p, action_dim), jnp.float32),
        grid=grid,
        in_specs=[
            # x: tiled over batch; feature dim kept at its true width.
            pl.BlockSpec((TM, state_dim), lambda i: (i, 0)),
            # Weights / biases: same block every iteration -> VMEM resident.
            pl.BlockSpec((state_dim, hidden), lambda i: (0, 0)),
            pl.BlockSpec((1, hidden), lambda i: (0, 0)),
            pl.BlockSpec((hidden, action_dim), lambda i: (0, 0)),
            pl.BlockSpec((1, action_dim), lambda i: (0, 0)),
        ],
        out_specs=pl.BlockSpec((TM, action_dim), lambda i: (i, 0)),
        compiler_params=pltpu.CompilerParams(
            dimension_semantics=("parallel",)),
        cost_estimate=cost,
    )(x_in, w1, b1, w2, b2)

    return out_p if B_p == B else out_p[:B]


def _reference(x, w1, b1, w2, b2, action_bound):
    b1 = b1.reshape(1, -1)
    b2 = b2.reshape(1, -1)
    return jnp.tanh(jnp.maximum(x @ w1 + b1, 0.0) @ w2 + b2) * action_bound


if __name__ == "__main__":
    # Small shapes consistent with the module: state_dim=8, hidden=32, action_dim=4.
    B, state_dim, hidden_dim, action_dim = 2, 8, 32, 4
    action_bound = 10.0

    key = jax.random.PRNGKey(0)
    kx, kw1, kb1, kw2, kb2, kx2 = jax.random.split(key, 6)

    x = jax.random.normal(kx, (B, state_dim), dtype=jnp.float32)

    # Deterministic parameter init (uniform, roughly matching nn.Linear scale).
    lim1 = 1.0 / jnp.sqrt(jnp.float32(state_dim))
    lim2 = 1.0 / jnp.sqrt(jnp.float32(hidden_dim))
    w1 = jax.random.uniform(kw1, (state_dim, hidden_dim), jnp.float32, -lim1, lim1)
    b1 = jax.random.uniform(kb1, (1, hidden_dim), jnp.float32, -lim1, lim1)
    w2 = jax.random.uniform(kw2, (hidden_dim, action_dim), jnp.float32, -lim2, lim2)
    b2 = jax.random.uniform(kb2, (1, action_dim), jnp.float32, -lim2, lim2)

    # 1) Tiny batch (spec shapes): single grid step.
    out = actor_forward(x, w1, b1, w2, b2, action_bound)
    out = jax.block_until_ready(out)
    ref = _reference(x, w1, b1, w2, b2, action_bound)
    assert out.shape == (B, action_dim)
    assert jnp.allclose(out, ref, atol=1e-5, rtol=1e-5)

    # 2) Larger, non-aligned batch: exercises the multi-step batch grid and the
    #    conditional row pad / slice.
    B_big = 300  # not a multiple of 8 or of the tile size
    x_big = jax.random.normal(kx2, (B_big, state_dim), dtype=jnp.float32)
    out_big = actor_forward(x_big, w1, b1, w2, b2, action_bound)
    out_big = jax.block_until_ready(out_big)
    ref_big = _reference(x_big, w1, b1, w2, b2, action_bound)
    assert out_big.shape == (B_big, action_dim)
    assert jnp.allclose(out_big, ref_big, atol=1e-5, rtol=1e-5)

    print("KERNEL_OK")
</pallas_src>

<mosaic_0001>
module attributes {stable_mosaic.version = 11 : i64} {
  func.func @_actor_kernel(%arg0: i32, %arg1: memref<8x8xf32, #tpu.memory_space<vmem>>, %arg2: memref<8x32xf32, #tpu.memory_space<vmem>>, %arg3: memref<1x32xf32, #tpu.memory_space<vmem>>, %arg4: memref<32x4xf32, #tpu.memory_space<vmem>>, %arg5: memref<1x4xf32, #tpu.memory_space<vmem>>, %arg6: memref<8x4xf32, #tpu.memory_space<vmem>>) attributes {dimension_semantics = [#tpu.dimension_semantics<parallel>], iteration_bounds = array<i64: 1>, scalar_prefetch = 0 : i64, scratch_operands = 0 : i64, tpu.core_type = #tpu.core_type<tc>, window_params = [{transform_indices = @transform_0, window_bounds = array<i64: 8, 8>}, {pipeline_mode = #tpu.pipeline_mode<synchronous>, transform_indices = @transform_1, window_bounds = array<i64: 8, 32>}, {pipeline_mode = #tpu.pipeline_mode<synchronous>, transform_indices = @transform_2, window_bounds = array<i64: 1, 32>}, {pipeline_mode = #tpu.pipeline_mode<synchronous>, transform_indices = @transform_3, window_bounds = array<i64: 32, 4>}, {pipeline_mode = #tpu.pipeline_mode<synchronous>, transform_indices = @transform_4, window_bounds = array<i64: 1, 4>}, {transform_indices = @transform_5, window_bounds = array<i64: 8, 4>}]} {
    %c0 = arith.constant 0 : index
    %c0_0 = arith.constant 0 : index
    %0 = vector.load %arg2[%c0, %c0_0] : memref<8x32xf32, #tpu.memory_space<vmem>>, vector<8x32xf32>
    %c0_1 = arith.constant 0 : index
    %c0_2 = arith.constant 0 : index
    %1 = vector.load %arg1[%c0_1, %c0_2] : memref<8x8xf32, #tpu.memory_space<vmem>>, vector<8x8xf32>
    %cst = arith.constant dense<0.000000e+00> : vector<8x32xf32>
    %2 = tpu.matmul %1, %0, %cst {dimension_numbers = #tpu.dot_dimension_numbers<[1], [0], [0], [1], [0, 0, 1, 1], [], []>} : vector<8x8xf32>, vector<8x32xf32>, vector<8x32xf32> -> vector<8x32xf32>
    %c0_3 = arith.constant 0 : index
    %c0_4 = arith.constant 0 : index
    %3 = vector.load %arg3[%c0_3, %c0_4] : memref<1x32xf32, #tpu.memory_space<vmem>>, vector<1x32xf32>
    %4 = vector.broadcast %3 : vector<1x32xf32> to vector<8x32xf32>
    %5 = arith.addf %2, %4 : vector<8x32xf32>
    %cst_5 = arith.constant 0.000000e+00 : f32
    %6 = vector.broadcast %cst_5 : f32 to vector<8x32xf32>
    %7 = arith.maximumf %5, %6 : vector<8x32xf32>
    %c0_6 = arith.constant 0 : index
    %c0_7 = arith.constant 0 : index
    %8 = vector.load %arg4[%c0_6, %c0_7] : memref<32x4xf32, #tpu.memory_space<vmem>>, vector<32x4xf32>
    %cst_8 = arith.constant dense<0.000000e+00> : vector<8x4xf32>
    %9 = tpu.matmul %7, %8, %cst_8 {dimension_numbers = #tpu.dot_dimension_numbers<[1], [0], [0], [1], [0, 0, 1, 1], [], []>} : vector<8x32xf32>, vector<32x4xf32>, vector<8x4xf32> -> vector<8x4xf32>
    %c0_9 = arith.constant 0 : index
    %c0_10 = arith.constant 0 : index
    %10 = vector.load %arg5[%c0_9, %c0_10] : memref<1x4xf32, #tpu.memory_space<vmem>>, vector<1x4xf32>
    %11 = vector.broadcast %10 : vector<1x4xf32> to vector<8x4xf32>
    %12 = arith.addf %9, %11 : vector<8x4xf32>
    %13 = math.tanh %12 : vector<8x4xf32>
    %cst_11 = arith.constant 1.000000e+01 : f32
    %14 = vector.broadcast %cst_11 : f32 to vector<8x4xf32>
    %15 = arith.mulf %13, %14 : vector<8x4xf32>
    %c0_12 = arith.constant 0 : index
    %c0_13 = arith.constant 0 : index
    %16 = vector.load %arg6[%c0_12, %c0_13] : memref<8x4xf32, #tpu.memory_space<vmem>>, vector<8x4xf32>
    tpu.vector_store %arg6[%c0_12, %c0_13], %15 {strides = array<i32>} : memref<8x4xf32, #tpu.memory_space<vmem>>, vector<8x4xf32>,
    return
  }
  func.func @transform_0(%arg0: i32) -> (i32, i32) {
    %c0_i32 = arith.constant 0 : i32
    %c0_i32_0 = arith.constant 0 : i32
    return %arg0, %c0_i32 : i32, i32
  }
  func.func @transform_1(%arg0: i32) -> (i32, i32) {
    %c0_i32 = arith.constant 0 : i32
    %c0_i32_0 = arith.constant 0 : i32
    %c0_i32_1 = arith.constant 0 : i32
    return %c0_i32, %c0_i32_0 : i32, i32
  }
  func.func @transform_2(%arg0: i32) -> (i32, i32) {
    %c0_i32 = arith.constant 0 : i32
    %c0_i32_0 = arith.constant 0 : i32
    %c0_i32_1 = arith.constant 0 : i32
    return %c0_i32, %c0_i32_0 : i32, i32
  }
  func.func @transform_3(%arg0: i32) -> (i32, i32) {
    %c0_i32 = arith.constant 0 : i32
    %c0_i32_0 = arith.constant 0 : i32
    %c0_i32_1 = arith.constant 0 : i32
    return %c0_i32, %c0_i32_0 : i32, i32
  }
  func.func @transform_4(%arg0: i32) -> (i32, i32) {
    %c0_i32 = arith.constant 0 : i32
    %c0_i32_0 = arith.constant 0 : i32
    %c0_i32_1 = arith.constant 0 : i32
    return %c0_i32, %c0_i32_0 : i32, i32
  }
  func.func @transform_5(%arg0: i32) -> (i32, i32) {
    %c0_i32 = arith.constant 0 : i32
    %c0_i32_0 = arith.constant 0 : i32
    return %arg0, %c0_i32 : i32, i32
  }
}

</mosaic_0001>

<bundles_post_ra>
// kernel: tpu_custom_call.1
= control target key start
LH: loop header
LB: loop body
LE: loop exit
PB: predicated region body
PF: predicated region fallthrough
CT: control target
= control target key end

     0   :  { %vm29_vm0 = vcmask 64512   ;;  %v228_v0 = vmov 0.0   ;;  %vm229_vm1 = vmmov 0   ;;  %vm115_vm2 = vcmask 261120   ;;  %s287_s1 = inlined_call_operand.vmem [shape: f32[8,32], index: 1, kind: input, shape index: {}]   ;;  %s288_s0 = inlined_call_operand.vmem [shape: f32[8,8], index: 0, kind: input, shape index: {}]   ;;  %s289_s3 = inlined_call_operand.vmem [shape: f32[32,4], index: 3, kind: input, shape index: {}]   ;;  %s290_s2 = inlined_call_operand.vmem [shape: f32[1,32], index: 2, kind: input, shape index: {}]   ;;  %s291_s4 = inlined_call_operand.vmem [shape: f32[1,4], index: 4, kind: input, shape index: {}]   ;;  %s292_s5 = inlined_call_operand.vmem [shape: f32[8,4], index: 5, kind: output, shape index: {}]  }
   0x1   :  { %208 = vmatprep.subr.mxu0 %v228_v0  ;;  %v20_v1 = vld [vmem:[%s287_s1] sm:$0xff]  ;;  %210 = vmatprep.mubr.msk.f32.mxu0 %vm229_vm1, %v228_v0  ;;  %v107_v3 = vld [vmem:[%s289_s3 + $0x18] sm:$0xff]  ;;  %v106_v4 = vld [vmem:[%s289_s3 + $0x10] sm:$0xff]  ;;  %vm191_vm3 = vcmask 31744  }
   0x2   :  { %v21_v2 = vld [vmem:[%s288_s0] sm:$0xff]  ;;  %209 = vmatpush3.msra.mxu0 %v20_v1  ;;  %213 = vmatprep.subr.mxu1 %v228_v0  ;;  %v105_v5 = vld [vmem:[%s289_s3 + $0x8] sm:$0xff] }
   0x3   :  { %211 = vmatmul.mubr.msk.f32.vlgmr.msra.gmra.mxu0 %vm29_vm0, %v21_v2  ;;  %214 = vmatpush3.msra.mxu1 %v107_v3  ;;  %v104_v6 = vld [vmem:[%s289_s3] sm:$0xff] }
   0x4   :  { %215 = vmatprep.subr.mxu1 %v228_v0  ;;  %221 = vmatprep.mubr.msk.f32.mxu1 %vm229_vm1, %v228_v0  ;;  %v197_v7 = vld [vmem:[%s290_s2] ss:$0 sm:$0xff] }
   0x5   :  { %216 = vmatpush3.msra.mxu1 %v106_v4  ;;  %v199_v12 = vld [vmem:[%s291_s4] ss:$0 sm:$0xff] }
   0x6   :  { %217 = vmatprep.subr.mxu1 %v228_v0 }
   0x7   :  { %218 = vmatpush3.msra.mxu1 %v105_v5 }
   0x8   :  { %219 = vmatprep.subr.mxu1 %v228_v0 }
   0x9   :  { %220 = vmatpush3.msra.mxu1 %v104_v6 }
  0xc3   :  { %v99_v8 = vpop.f32.mrf.mxu0 }
  0xc4   :  { %v100_v9 = vadd.f32 %v197_v7, %v99_v8 }
  0xc5   :  { %v212_v10 = vpop.f32.mrf.mxu0 }
  0xc6   :  { %v103_v11 = vmax.f32 %v100_v9, 0.0 }
  0xc8   :  { %222 = vmatmul.mubr.msk.f32.vlgmr.msra.gmra.mxu1 %vm115_vm2, %v103_v11 }
 0x188   :  { %v185_v13 = vpop.f32.mrf.mxu1 }
 0x189   :  { %v186_v14 = vadd.f32 %v199_v12, %v185_v13 }
 0x18a   :  { %v223_v15 = vpop.f32.mrf.mxu1 }
 0x18b   :  { %226 = vtanh.f32 %v186_v14 }
 0x198   :  { %v227_v16 = vpop.eup %226 }
 0x199   :  { %v190_v17 = vmul.f32 10.0, %v227_v16 }
 0x19b   :  { %192 = vst.msk [vmem:[%s292_s5] sm:$0xff] %vm191_vm3, %v190_v17 }

</bundles_post_ra>
